<compile_context>
chip_gen: v7x
topology: tpu7x:2x2x1
jax: 0.10.0
libtpu: 0.0.40
codegen_flags: <defaults>
</compile_context>

<pallas_src>
import jax
import jax.numpy as jnp
from jax.experimental import pallas as pl
from jax.experimental.pallas import tpu as pltpu


def _square_kernel(x_ref, o_ref):
    x = x_ref[...]
    o_ref[...] = x * x


def _vmem_capacity_bytes() -> int:
    """Physical VMEM per TensorCore; conservative fallback if query fails."""
    try:
        return int(pltpu.get_tpu_info().vmem_capacity_bytes)
    except Exception:
        return 64 * 1024 * 1024  # v7x per-TC size; safe lower bound everywhere.


def square(
    x: jax.Array,
    *,
    min_kernel_bytes: int = 256 * 1024,
    target_block_bytes: int | None = None,
    donate: bool = False,
) -> jax.Array:
    """Elementwise x**2; Pallas TPU kernel for large tensors, fusible jnp path for tiny ones."""
    orig_shape = x.shape
    dtype = x.dtype
    n = x.size
    if n == 0:
        return x

    itemsize = jnp.dtype(dtype).itemsize

    # Tiny tensors: let XLA fuse the square into neighbouring ops instead of
    # forcing a standalone HBM read+write through a custom call.
    if n * itemsize < min_kernel_bytes:
        return jnp.square(x)

    # Native sublane packing: 8 for 32-bit, 16 for bf16, 32 for int8/fp8.
    sublane = max(8, 32 // itemsize)
    LANE = 128

    # --- Choose a lane width. Prefer one that divides n exactly (no pad, no
    # trailing slice) and keeps at least `sublane` rows for full vreg tiles.
    lanes = None
    for cand in (2048, 1024, 512, 256, 128):
        if n % cand == 0 and n // cand >= sublane:
            lanes = cand
            break
    if lanes is None:
        for cand in (2048, 1024, 512, 256, 128):
            if n % cand == 0:
                lanes = cand
                break
    if lanes is None:
        lanes = LANE  # fallback: minimal (< 128 element) pad

    rows = pl.cdiv(n, lanes)
    pad = rows * lanes - n  # 0 in the divisible fast path, < lanes otherwise

    # --- VMEM-capacity-aware block sizing.
    cap = _vmem_capacity_bytes()                       # 64 MiB v7x, 128 MiB v5e/v6e
    vmem_limit = min((cap * 5) // 8, 64 * 1024 * 1024)  # 40 MiB v7x, 64 MiB v5e/v6e
    if target_block_bytes is None:
        # (in + out) x double buffering = 4 blocks resident; keep headroom.
        target_block_bytes = max(1 << 20, vmem_limit // 5)  # ~8 MiB v7x, ~12 MiB v5e/v6e

    if rows <= sublane:
        br = rows  # full extent on the sublane axis (allowed even if < 8)
    else:
        br_target = max(sublane, target_block_bytes // (lanes * itemsize))
        br = min(br_target, rows)
        br = max(sublane, (br // sublane) * sublane)

    num_blocks = pl.cdiv(rows, br)

    # Prefer >= 4 blocks (>= 2 per TensorCore on dual-TC chips) when there is
    # enough data, so DMA-in / compute / DMA-out stay overlapped per core.
    if num_blocks < 4 and rows >= 4 * sublane:
        br = max(sublane, (pl.cdiv(rows, 4) // sublane) * sublane)
        num_blocks = pl.cdiv(rows, br)

    # --- Reshape (and pad only if strictly necessary).
    flat = x.reshape(-1)
    if pad:
        # Rare path: single small pad; padded values are squared then discarded.
        flat = jnp.pad(flat, (0, pad))
    x2d = flat.reshape(rows, lanes)

    pallas_kwargs = {}
    if donate:
        # Same shape/dtype in and out: elide the second HBM allocation when the
        # caller can donate x.
        pallas_kwargs["input_output_aliases"] = {0: 0}

    out2d = pl.pallas_call(
        _square_kernel,
        out_shape=jax.ShapeDtypeStruct((rows, lanes), dtype),
        grid=(num_blocks,),
        in_specs=[pl.BlockSpec((br, lanes), lambda i: (i, 0))],
        out_specs=pl.BlockSpec((br, lanes), lambda i: (i, 0)),
        compiler_params=pltpu.CompilerParams(
            dimension_semantics=("parallel",),
            vmem_limit_bytes=vmem_limit,
        ),
        cost_estimate=pl.CostEstimate(
            flops=n, transcendentals=0, bytes_accessed=2 * n * itemsize
        ),
        **pallas_kwargs,
    )(x2d)

    out_flat = out2d.reshape(-1)
    if pad:
        out_flat = out_flat[:n]
    return out_flat.reshape(orig_shape)


if __name__ == "__main__":
    key = jax.random.PRNGKey(0)
    # Small NCHW input consistent with the module's usage in ShallowNet.
    x = jax.random.normal(key, (2, 4, 16, 16), dtype=jnp.float32)
    ref = jnp.square(x)

    # 1) Force the Pallas kernel on the ShallowNet-sized input (the default
    #    wrapper would route this tiny tensor to the fusible jnp.square path).
    out = jax.block_until_ready(square(x, min_kernel_bytes=0))
    assert out.shape == x.shape
    assert out.dtype == x.dtype
    assert jnp.allclose(out, ref, rtol=1e-6, atol=1e-6), "mismatch vs reference"

    # 2) Default (small-tensor, fusion-friendly) path.
    out_small = jax.block_until_ready(square(x))
    assert jnp.allclose(out_small, ref, rtol=1e-6, atol=1e-6)

    # 3) Larger tensor hitting the no-pad fast path (element count divisible by 2048).
    k1, k2 = jax.random.split(key)
    x_big = jax.random.normal(k1, (2, 8, 64, 128), dtype=jnp.float32)
    out_big = jax.block_until_ready(square(x_big))
    assert jnp.allclose(out_big, jnp.square(x_big), rtol=1e-6, atol=1e-6)

    # 4) Awkward size exercising the pad + masked-final-block path.
    x_odd = jax.random.normal(k2, (3, 5, 100, 131), dtype=jnp.float32)
    out_odd = jax.block_until_ready(square(x_odd))
    assert jnp.allclose(out_odd, jnp.square(x_odd), rtol=1e-6, atol=1e-6)

    print("KERNEL_OK")
</pallas_src>

<mosaic_0001>
module attributes {stable_mosaic.version = 11 : i64} {
  func.func @_square_kernel(%arg0: i32, %arg1: memref<8x256xf32, #tpu.memory_space<vmem>>, %arg2: memref<8x256xf32, #tpu.memory_space<vmem>>) attributes {dimension_semantics = [#tpu.dimension_semantics<parallel>], iteration_bounds = array<i64: 1>, scalar_prefetch = 0 : i64, scratch_operands = 0 : i64, tpu.core_type = #tpu.core_type<tc>, window_params = [{transform_indices = @transform_0, window_bounds = array<i64: 8, 256>}, {transform_indices = @transform_1, window_bounds = array<i64: 8, 256>}]} {
    %c0 = arith.constant 0 : index
    %c0_0 = arith.constant 0 : index
    %0 = vector.load %arg1[%c0, %c0_0] : memref<8x256xf32, #tpu.memory_space<vmem>>, vector<8x256xf32>
    %1 = arith.mulf %0, %0 : vector<8x256xf32>
    %c0_1 = arith.constant 0 : index
    %c0_2 = arith.constant 0 : index
    %2 = vector.load %arg2[%c0_1, %c0_2] : memref<8x256xf32, #tpu.memory_space<vmem>>, vector<8x256xf32>
    tpu.vector_store %arg2[%c0_1, %c0_2], %1 {strides = array<i32>} : memref<8x256xf32, #tpu.memory_space<vmem>>, vector<8x256xf32>,
    return
  }
  func.func @transform_0(%arg0: i32) -> (i32, i32) {
    %c0_i32 = arith.constant 0 : i32
    %c0_i32_0 = arith.constant 0 : i32
    return %arg0, %c0_i32 : i32, i32
  }
  func.func @transform_1(%arg0: i32) -> (i32, i32) {
    %c0_i32 = arith.constant 0 : i32
    %c0_i32_0 = arith.constant 0 : i32
    return %arg0, %c0_i32 : i32, i32
  }
}

</mosaic_0001>

<bundles_post_ra>
// kernel: tpu_custom_call.1
= control target key start
LH: loop header
LB: loop body
LE: loop exit
PB: predicated region body
PF: predicated region fallthrough
CT: control target
= control target key end

     0   :  { %6 = vsyncpa [#allocation3], 0  ;;  %s128_s0 = inlined_call_operand.hbm [shape: f32[8,256], index: 0, kind: input, shape index: {}]   ;;  %s129_s1 = inlined_call_operand.hbm [shape: f32[8,256], index: 1, kind: output, shape index: {}]  }
   0x1   :  { %7 = vsyncpa [#allocation4], 0  ;;  %s92_s6 = smov [#allocation2]   ;;  %s44_s10 = scalar_lea.hbm %s128_s0, 256 }
   0x2   :  { %s14_s7 = sshll.u32 %s92_s6, 4  ;;  %p45_p0 = scmp.ne.s32.totalorder %s128_s0, %s44_s10  ;;  %s15_s7 = int_to_ptr.vmem [resolvable:$true] %s14_s7 }
   0x3   :  { %p48_p1 = scmp.lt.u32.totalorder %s44_s10, %s128_s0 }
   0x5   :  { %p50_p2 = pnand %p48_p1, %p45_p0 }
   0x7   :  { %53 = shalt.err (!%p50_p2)
}
   0x8   :  { %s54_s15 = scalar_lea.vmem %s15_s7, 256  ;;  %p59_p4 = scmp.lt.s32.totalorder %s15_s7, %s15_s7 }
   0x9   :  { %p55_p3 = scmp.ne.s32.totalorder %s15_s7, %s54_s15  ;;  %p60_p5 = scmp.lt.s32.totalorder %s54_s15, %s54_s15 }
   0xb   :  { %p61_p6 = por %p60_p5, %p59_p4 }
   0xd   :  { %p62_p7 = pnand %p61_p6, %p55_p3 }
   0xf   :  { %65 = shalt.err (!%p62_p7)
}
  0x10   :  { %17 = dma.hbm_to_vmem [thread:$0]  %s128_s0, 256, %s15_s7, [#allocation3]  }
  0x11   :  { %88 = dma.done.wait [#allocation3], 256  }
  0x12   :  { %89 = vsyncadd [#allocation3], 4294967040  ;;  %s93_s18 = smov [#allocation5]   ;;  %v21_v0 = vld [vmem:[#allocation2] sm:$0xff]  ;;  %v22_v1 = vld [vmem:[#allocation2 + $0x8] sm:$0xff] }
  0x13   :  { %s33_s19 = sshll.u32 %s93_s18, 4  ;;  %v23_v2 = vmul.f32 %v21_v0, %v21_v0  ;;  %v24_v3 = vmul.f32 %v22_v1, %v22_v1  ;;  %s34_s19 = int_to_ptr.vmem [resolvable:$true] %s33_s19 }
  0x14   :  { %s66_s20 = scalar_lea.vmem %s34_s19, 256  ;;  %p71_p9 = scmp.lt.s32.totalorder %s34_s19, %s34_s19 }
  0x15   :  { %25 = vst [vmem:[#allocation5] sm:$0xff] %v23_v2  ;;  %26 = vst [vmem:[#allocation5 + $0x8] sm:$0xff] %v24_v3  ;;  %p67_p8 = scmp.ne.s32.totalorder %s34_s19, %s66_s20  ;;  %p72_p10 = scmp.lt.s32.totalorder %s66_s20, %s66_s20 }
  0x17   :  { %p73_p11 = por %p72_p10, %p71_p9 }
  0x19   :  { %p74_p12 = pnand %p73_p11, %p67_p8 }
  0x1b   :  { %77 = shalt.err (!%p74_p12)
}
  0x1c   :  { %s78_s22 = scalar_lea.hbm %s129_s1, 256 }
  0x1d   :  { %p79_p13 = scmp.ne.s32.totalorder %s129_s1, %s78_s22  ;;  %p82_p0 = scmp.lt.u32.totalorder %s78_s22, %s129_s1 }
  0x1f   :  { %p84_p1 = pnand %p82_p0, %p79_p13 }
  0x21   :  { %87 = shalt.err (!%p84_p1)
}
  0x22   :  { %36 = dma.vmem_to_hbm [thread:$0]  %s34_s19, 256, %s129_s1, [#allocation4]  }
  0x23   :  { %90 = dma.done.wait [#allocation4], 256  }
  0x24   :  { %91 = vsyncadd [#allocation4], 4294967040 }
  0x25   :  { %40 = vsyncpa [#allocation3], 1 }
  0x26   :  { %41 = vsyncpa [#allocation4], 1 }

</bundles_post_ra>
